<compile_context>
chip_gen: v6e
topology: v6e:2x2x1
jax: 0.10.0
libtpu: 0.0.40
codegen_flags: <defaults>
</compile_context>

<pallas_src>
import math

import numpy as np
import jax
import jax.numpy as jnp
from jax.experimental import pallas as pl
from jax.experimental.pallas import tpu as pltpu


# ---------------------------------------------------------------------------
# Pallas kernel: whole forward for one batch tile
# ---------------------------------------------------------------------------
def network_kernel(
    x_ref,                    # (TB, in_dim)    bf16
    w1_ref, b1_ref,           # (in_dim, 128) bf16 / (1, 128) f32
    w2_ref, b2_ref,           # (128, 128)    bf16 / (1, 128) f32
    wh_ref, bh_ref,           # fused adv|val hidden head (128, 256) bf16 / (1, 256) f32
    wo_ref, bo_ref,           # fused output head WITH dueling folded in (256, OA) bf16 / (1, OA) f32
    sumb_ref,                 # (OA, OA) f32  block-diag "sum atoms & broadcast back"
    sup_ref,                  # (OA, out_pad) f32  support-expectation (lane-padded)
    q_ref,                    # (TB, out_pad) f32
):
    bf16 = jnp.bfloat16
    x = x_ref[...]                                                     # bf16

    # feature_layer: Linear -> ReLU -> Linear -> ReLU  (bf16 MXU, f32 accumulate)
    f = jnp.dot(x, w1_ref[...], preferred_element_type=jnp.float32) + b1_ref[...]
    f = jnp.maximum(f, 0.0)
    f = jnp.dot(f.astype(bf16), w2_ref[...],
                preferred_element_type=jnp.float32) + b2_ref[...]
    f = jnp.maximum(f, 0.0)                                            # (TB, 128)

    # fused noisy hidden heads (+ ReLU): [adv_hid | val_hid]
    hid = jnp.dot(f.astype(bf16), wh_ref[...],
                  preferred_element_type=jnp.float32) + bh_ref[...]
    hid = jnp.maximum(hid, 0.0)                                        # (TB, 256)

    # fused output head with the dueling combine folded in -> per-(action,atom)
    # logits  q_atoms[b, o*A+a] = value[a] + adv[o,a] - mean_o' adv[o',a]
    q_atoms = jnp.dot(hid.astype(bf16), wo_ref[...],
                      preferred_element_type=jnp.float32) + bo_ref[...]  # (TB, OA)

    # per-action softmax over atoms:
    #   - a single global row max bounds exp() against overflow (softmax is
    #     invariant to any per-action-constant shift),
    #   - the denominator (sum over atoms, broadcast back to every atom of the
    #     same action) comes from one block-diagonal constant matmul,
    #   - eps-clamp + exact division guard the (astronomically rare) case where
    #     every atom of a dominated action underflows -> no NaN/Inf path.
    q_atoms = q_atoms - jnp.max(q_atoms, axis=-1, keepdims=True)
    e = jnp.exp(q_atoms)                                               # (TB, OA)
    denom = jnp.dot(e, sumb_ref[...], preferred_element_type=jnp.float32)
    dist = e / jnp.maximum(denom, 1e-30)
    dist = jnp.maximum(dist, 0.001)                                    # clamp(min=0.001)

    # expectation against support (per action) -> dense lane-padded store
    q_ref[...] = jnp.dot(dist, sup_ref[...], preferred_element_type=jnp.float32)


# ---------------------------------------------------------------------------
# Parameter construction (deterministic, mimics the PyTorch init semantics)
# ---------------------------------------------------------------------------
def _linear_params(key, in_f, out_f):
    k1, k2 = jax.random.split(key)
    bound = 1.0 / math.sqrt(in_f)
    w = jax.random.uniform(k1, (out_f, in_f), jnp.float32, -bound, bound)
    b = jax.random.uniform(k2, (out_f,), jnp.float32, -bound, bound)
    return w, b


def _scale_noise(key, size):
    x = jax.random.normal(key, (size,), jnp.float32)
    return jnp.sign(x) * jnp.sqrt(jnp.abs(x))


def _noisy_linear_params(key, in_f, out_f, std_init=0.5):
    k1, k2, k3, k4 = jax.random.split(key, 4)
    mu_range = 1.0 / math.sqrt(in_f)
    weight_mu = jax.random.uniform(k1, (out_f, in_f), jnp.float32, -mu_range, mu_range)
    weight_sigma = jnp.full((out_f, in_f), std_init / math.sqrt(in_f), jnp.float32)
    bias_mu = jax.random.uniform(k2, (out_f,), jnp.float32, -mu_range, mu_range)
    bias_sigma = jnp.full((out_f,), std_init / math.sqrt(out_f), jnp.float32)
    eps_in = _scale_noise(k3, in_f)
    eps_out = _scale_noise(k4, out_f)
    w_eff = weight_mu + weight_sigma * jnp.outer(eps_out, eps_in)
    b_eff = bias_mu + bias_sigma * eps_out
    return w_eff, b_eff


def _build_all_params(key, in_dim, out_dim, atom_size, hidden=128):
    ks = jax.random.split(key, 6)
    w1, b1 = _linear_params(ks[0], in_dim, hidden)
    w2, b2 = _linear_params(ks[1], hidden, hidden)
    wah, bah = _noisy_linear_params(ks[2], hidden, hidden)
    wa, ba = _noisy_linear_params(ks[3], hidden, out_dim * atom_size)
    wvh, bvh = _noisy_linear_params(ks[4], hidden, hidden)
    wv, bv = _noisy_linear_params(ks[5], hidden, atom_size)
    return (w1, b1, w2, b2, wah, bah, wa, ba, wvh, bvh, wv, bv)


def _build_constant_mats(out_dim, atom_size, support, out_pad):
    """Constant block-structured matrices for the vectorized epilogue."""
    OA = out_dim * atom_size
    # dueling combine: head (OA adv | atom value) -> per-(action,atom) logits
    duel = np.zeros((OA + atom_size, OA), np.float32)
    for o in range(out_dim):
        for a in range(atom_size):
            col = o * atom_size + a
            duel[col, col] += 1.0
            for o2 in range(out_dim):
                duel[o2 * atom_size + a, col] -= 1.0 / out_dim
            duel[OA + a, col] += 1.0                    # value row
    # block-diagonal "sum atoms within an action, broadcast back" matrix
    sumb = np.zeros((OA, OA), np.float32)
    for o in range(out_dim):
        sumb[o * atom_size:(o + 1) * atom_size,
             o * atom_size:(o + 1) * atom_size] = 1.0
    # support expectation, zero-padded to a lane-dense output width
    sup_np = np.asarray(support, np.float32).reshape(-1)
    supmat = np.zeros((OA, out_pad), np.float32)
    for o in range(out_dim):
        supmat[o * atom_size:(o + 1) * atom_size, o] = sup_np
    return jnp.asarray(duel), jnp.asarray(sumb), jnp.asarray(supmat)


def _round_up(n, m):
    return ((n + m - 1) // m) * m


# ---------------------------------------------------------------------------
# Wrapper
# ---------------------------------------------------------------------------
def make_network(in_dim, out_dim, atom_size, support, key, *, batch_tile=1024):
    hidden = 128
    OA = out_dim * atom_size
    out_pad = max(128, _round_up(out_dim, 128))

    (w1, b1, w2, b2, wah, bah, wa, ba, wvh, bvh, wv, bv) = _build_all_params(
        key, in_dim, out_dim, atom_size, hidden)

    duel, sumb, supmat = _build_constant_mats(out_dim, atom_size, support, out_pad)

    # fused hidden head: (128, 256) = [adv_hid | val_hid]
    wh = jnp.concatenate([wah.T, wvh.T], axis=1)
    bh = jnp.concatenate([bah, bvh])[None, :]
    # fused block-diagonal output head, then fold the dueling combine into it
    wo_full = jnp.zeros((2 * hidden, OA + atom_size), jnp.float32)
    wo_full = wo_full.at[:hidden, :OA].set(wa.T)
    wo_full = wo_full.at[hidden:, OA:].set(wv.T)
    bo_full = jnp.concatenate([ba, bv])
    wo_duel = wo_full @ duel                                  # (256, OA)
    bo_duel = (bo_full @ duel)[None, :]                       # (1, OA)

    bf16 = jnp.bfloat16
    params = (
        w1.T.astype(bf16), b1[None, :],
        w2.T.astype(bf16), b2[None, :],
        wh.astype(bf16), bh,
        wo_duel.astype(bf16), bo_duel,
        sumb, supmat,
    )
    # weights / constants: full-array blocks, VMEM-resident across the batch grid
    param_specs = [pl.BlockSpec(p.shape, lambda i: (0, 0)) for p in params]

    @jax.jit
    def forward(x):
        b = x.shape[0]
        x = x.astype(bf16)                     # halve x HBM traffic into the kernel
        # batch tile: multiple of 16 (bf16 sublane pack), at least 2 grid steps
        # when the batch allows it (v7x megacore), capped at batch_tile.
        tb = max(16, min(batch_tile, _round_up(pl.cdiv(b, 2), 16)))
        grid = (pl.cdiv(b, tb),)               # ragged tail handled by Pallas masking
        q = pl.pallas_call(
            network_kernel,
            out_shape=jax.ShapeDtypeStruct((b, out_pad), jnp.float32),
            grid=grid,
            in_specs=[pl.BlockSpec((tb, in_dim), lambda i: (i, 0))] + param_specs,
            out_specs=pl.BlockSpec((tb, out_pad), lambda i: (i, 0)),
            compiler_params=pltpu.CompilerParams(
                dimension_semantics=("parallel",),
                vmem_limit_bytes=32 * 1024 * 1024,
            ),
        )(x, *params)
        return q[:, :out_dim]

    return forward


# ---------------------------------------------------------------------------
# Pure-JAX reference for sanity checking (identical params from same key)
# ---------------------------------------------------------------------------
def make_reference(in_dim, out_dim, atom_size, support, key):
    (w1, b1, w2, b2, wah, bah, wa, ba, wvh, bvh, wv, bv) = _build_all_params(
        key, in_dim, out_dim, atom_size)

    def forward(x):
        f = jax.nn.relu(x @ w1.T + b1)
        f = jax.nn.relu(f @ w2.T + b2)
        adv_hid = jax.nn.relu(f @ wah.T + bah)
        val_hid = jax.nn.relu(f @ wvh.T + bvh)
        advantage = (adv_hid @ wa.T + ba).reshape(-1, out_dim, atom_size)
        value = (val_hid @ wv.T + bv).reshape(-1, 1, atom_size)
        q_atoms = value + advantage - advantage.mean(axis=1, keepdims=True)
        dist = jax.nn.softmax(q_atoms, axis=-1)
        dist = jnp.clip(dist, 0.001, None)
        return jnp.sum(dist * support, axis=2)

    return forward


if __name__ == "__main__":
    B, IN_DIM, OUT_DIM, ATOM_SIZE = 2, 8, 4, 8
    support = jnp.linspace(0.0, 10.0, ATOM_SIZE, dtype=jnp.float32)

    key = jax.random.PRNGKey(0)
    pkey, xkey = jax.random.split(key)

    x = jax.random.normal(xkey, (B, IN_DIM), jnp.float32)

    net = make_network(IN_DIM, OUT_DIM, ATOM_SIZE, support, pkey)
    q = net(x)
    jax.block_until_ready(q)

    # sanity check against the f32 pure-JAX reference built from the same key
    # (tolerance accounts for bf16 MXU inputs in the kernel)
    q_ref = make_reference(IN_DIM, OUT_DIM, ATOM_SIZE, support, pkey)(x)
    assert q.shape == (B, OUT_DIM)
    assert bool(jnp.all(jnp.isfinite(q)))
    assert jnp.allclose(q, q_ref, atol=1e-1, rtol=5e-2), (q, q_ref)

    print("KERNEL_OK")
</pallas_src>

<mosaic_0001>
module attributes {stable_mosaic.version = 11 : i64} {
  func.func @network_kernel(%arg0: i32, %arg1: memref<16x8xbf16, #tpu.memory_space<vmem>>, %arg2: memref<8x128xbf16, #tpu.memory_space<vmem>>, %arg3: memref<1x128xf32, #tpu.memory_space<vmem>>, %arg4: memref<128x128xbf16, #tpu.memory_space<vmem>>, %arg5: memref<1x128xf32, #tpu.memory_space<vmem>>, %arg6: memref<128x256xbf16, #tpu.memory_space<vmem>>, %arg7: memref<1x256xf32, #tpu.memory_space<vmem>>, %arg8: memref<256x32xbf16, #tpu.memory_space<vmem>>, %arg9: memref<1x32xf32, #tpu.memory_space<vmem>>, %arg10: memref<32x32xf32, #tpu.memory_space<vmem>>, %arg11: memref<32x128xf32, #tpu.memory_space<vmem>>, %arg12: memref<16x128xf32, #tpu.memory_space<vmem>>) attributes {dimension_semantics = [#tpu.dimension_semantics<parallel>], iteration_bounds = array<i64: 1>, scalar_prefetch = 0 : i64, scratch_operands = 0 : i64, tpu.core_type = #tpu.core_type<tc>, window_params = [{transform_indices = @transform_0, window_bounds = array<i64: 16, 8>}, {pipeline_mode = #tpu.pipeline_mode<synchronous>, transform_indices = @transform_1, window_bounds = array<i64: 8, 128>}, {pipeline_mode = #tpu.pipeline_mode<synchronous>, transform_indices = @transform_2, window_bounds = array<i64: 1, 128>}, {pipeline_mode = #tpu.pipeline_mode<synchronous>, transform_indices = @transform_3, window_bounds = array<i64: 128, 128>}, {pipeline_mode = #tpu.pipeline_mode<synchronous>, transform_indices = @transform_4, window_bounds = array<i64: 1, 128>}, {pipeline_mode = #tpu.pipeline_mode<synchronous>, transform_indices = @transform_5, window_bounds = array<i64: 128, 256>}, {pipeline_mode = #tpu.pipeline_mode<synchronous>, transform_indices = @transform_6, window_bounds = array<i64: 1, 256>}, {pipeline_mode = #tpu.pipeline_mode<synchronous>, transform_indices = @transform_7, window_bounds = array<i64: 256, 32>}, {pipeline_mode = #tpu.pipeline_mode<synchronous>, transform_indices = @transform_8, window_bounds = array<i64: 1, 32>}, {pipeline_mode = #tpu.pipeline_mode<synchronous>, transform_indices = @transform_9, window_bounds = array<i64: 32, 32>}, {pipeline_mode = #tpu.pipeline_mode<synchronous>, transform_indices = @transform_10, window_bounds = array<i64: 32, 128>}, {transform_indices = @transform_11, window_bounds = array<i64: 16, 128>}]} {
    %c0 = arith.constant 0 : index
    %c0_0 = arith.constant 0 : index
    %0 = vector.load %arg1[%c0, %c0_0] : memref<16x8xbf16, #tpu.memory_space<vmem>>, vector<16x8xbf16>
    %c0_1 = arith.constant 0 : index
    %c0_2 = arith.constant 0 : index
    %1 = vector.load %arg2[%c0_1, %c0_2] : memref<8x128xbf16, #tpu.memory_space<vmem>>, vector<8x128xbf16>
    %cst = arith.constant dense<0.000000e+00> : vector<16x128xf32>
    %2 = tpu.matmul %0, %1, %cst {dimension_numbers = #tpu.dot_dimension_numbers<[1], [0], [0], [1], [0, 0, 1, 1], [], []>} : vector<16x8xbf16>, vector<8x128xbf16>, vector<16x128xf32> -> vector<16x128xf32>
    %c0_3 = arith.constant 0 : index
    %c0_4 = arith.constant 0 : index
    %3 = vector.load %arg3[%c0_3, %c0_4] : memref<1x128xf32, #tpu.memory_space<vmem>>, vector<1x128xf32>
    %4 = vector.broadcast %3 : vector<1x128xf32> to vector<16x128xf32>
    %5 = arith.addf %2, %4 : vector<16x128xf32>
    %cst_5 = arith.constant 0.000000e+00 : f32
    %6 = vector.broadcast %cst_5 : f32 to vector<16x128xf32>
    %7 = arith.maximumf %5, %6 : vector<16x128xf32>
    %8 = arith.truncf %7 : vector<16x128xf32> to vector<16x128xbf16>
    %c0_6 = arith.constant 0 : index
    %c0_7 = arith.constant 0 : index
    %9 = vector.load %arg4[%c0_6, %c0_7] : memref<128x128xbf16, #tpu.memory_space<vmem>>, vector<128x128xbf16>
    %cst_8 = arith.constant dense<0.000000e+00> : vector<16x128xf32>
    %10 = tpu.matmul %8, %9, %cst_8 {dimension_numbers = #tpu.dot_dimension_numbers<[1], [0], [0], [1], [0, 0, 1, 1], [], []>} : vector<16x128xbf16>, vector<128x128xbf16>, vector<16x128xf32> -> vector<16x128xf32>
    %c0_9 = arith.constant 0 : index
    %c0_10 = arith.constant 0 : index
    %11 = vector.load %arg5[%c0_9, %c0_10] : memref<1x128xf32, #tpu.memory_space<vmem>>, vector<1x128xf32>
    %12 = vector.broadcast %11 : vector<1x128xf32> to vector<16x128xf32>
    %13 = arith.addf %10, %12 : vector<16x128xf32>
    %cst_11 = arith.constant 0.000000e+00 : f32
    %14 = vector.broadcast %cst_11 : f32 to vector<16x128xf32>
    %15 = arith.maximumf %13, %14 : vector<16x128xf32>
    %16 = arith.truncf %15 : vector<16x128xf32> to vector<16x128xbf16>
    %c0_12 = arith.constant 0 : index
    %c0_13 = arith.constant 0 : index
    %17 = vector.load %arg6[%c0_12, %c0_13] : memref<128x256xbf16, #tpu.memory_space<vmem>>, vector<128x256xbf16>
    %cst_14 = arith.constant dense<0.000000e+00> : vector<16x256xf32>
    %18 = tpu.matmul %16, %17, %cst_14 {dimension_numbers = #tpu.dot_dimension_numbers<[1], [0], [0], [1], [0, 0, 1, 1], [], []>} : vector<16x128xbf16>, vector<128x256xbf16>, vector<16x256xf32> -> vector<16x256xf32>
    %c0_15 = arith.constant 0 : index
    %c0_16 = arith.constant 0 : index
    %19 = vector.load %arg7[%c0_15, %c0_16] : memref<1x256xf32, #tpu.memory_space<vmem>>, vector<1x256xf32>
    %20 = vector.broadcast %19 : vector<1x256xf32> to vector<16x256xf32>
    %21 = arith.addf %18, %20 : vector<16x256xf32>
    %cst_17 = arith.constant 0.000000e+00 : f32
    %22 = vector.broadcast %cst_17 : f32 to vector<16x256xf32>
    %23 = arith.maximumf %21, %22 : vector<16x256xf32>
    %24 = arith.truncf %23 : vector<16x256xf32> to vector<16x256xbf16>
    %c0_18 = arith.constant 0 : index
    %c0_19 = arith.constant 0 : index
    %25 = vector.load %arg8[%c0_18, %c0_19] : memref<256x32xbf16, #tpu.memory_space<vmem>>, vector<256x32xbf16>
    %cst_20 = arith.constant dense<0.000000e+00> : vector<16x32xf32>
    %26 = tpu.matmul %24, %25, %cst_20 {dimension_numbers = #tpu.dot_dimension_numbers<[1], [0], [0], [1], [0, 0, 1, 1], [], []>} : vector<16x256xbf16>, vector<256x32xbf16>, vector<16x32xf32> -> vector<16x32xf32>
    %c0_21 = arith.constant 0 : index
    %c0_22 = arith.constant 0 : index
    %27 = vector.load %arg9[%c0_21, %c0_22] : memref<1x32xf32, #tpu.memory_space<vmem>>, vector<1x32xf32>
    %28 = vector.broadcast %27 : vector<1x32xf32> to vector<16x32xf32>
    %29 = arith.addf %26, %28 : vector<16x32xf32>
    %cst_23 = arith.constant dense<0xFF800000> : vector<16xf32>
    %30 = vector.multi_reduction <maximumf>, %29, %cst_23 [1] : vector<16x32xf32> to vector<16xf32>
    %31 = vector.shape_cast %30 : vector<16xf32> to vector<16x1xf32>
    %32 = vector.broadcast %31 : vector<16x1xf32> to vector<16x32xf32>
    %33 = arith.subf %29, %32 : vector<16x32xf32>
    %34 = math.exp %33 : vector<16x32xf32>
    %c0_24 = arith.constant 0 : index
    %c0_25 = arith.constant 0 : index
    %35 = vector.load %arg10[%c0_24, %c0_25] : memref<32x32xf32, #tpu.memory_space<vmem>>, vector<32x32xf32>
    %cst_26 = arith.constant dense<0.000000e+00> : vector<16x32xf32>
    %36 = tpu.matmul %34, %35, %cst_26 {dimension_numbers = #tpu.dot_dimension_numbers<[1], [0], [0], [1], [0, 0, 1, 1], [], []>} : vector<16x32xf32>, vector<32x32xf32>, vector<16x32xf32> -> vector<16x32xf32>
    %cst_27 = arith.constant 1.000000e-30 : f32
    %37 = vector.broadcast %cst_27 : f32 to vector<16x32xf32>
    %38 = arith.maximumf %36, %37 : vector<16x32xf32>
    %39 = arith.divf %34, %38 : vector<16x32xf32>
    %cst_28 = arith.constant 1.000000e-03 : f32
    %40 = vector.broadcast %cst_28 : f32 to vector<16x32xf32>
    %41 = arith.maximumf %39, %40 : vector<16x32xf32>
    %c0_29 = arith.constant 0 : index
    %c0_30 = arith.constant 0 : index
    %42 = vector.load %arg11[%c0_29, %c0_30] : memref<32x128xf32, #tpu.memory_space<vmem>>, vector<32x128xf32>
    %cst_31 = arith.constant dense<0.000000e+00> : vector<16x128xf32>
    %43 = tpu.matmul %41, %42, %cst_31 {dimension_numbers = #tpu.dot_dimension_numbers<[1], [0], [0], [1], [0, 0, 1, 1], [], []>} : vector<16x32xf32>, vector<32x128xf32>, vector<16x128xf32> -> vector<16x128xf32>
    %c0_32 = arith.constant 0 : index
    %c0_33 = arith.constant 0 : index
    %44 = vector.load %arg12[%c0_32, %c0_33] : memref<16x128xf32, #tpu.memory_space<vmem>>, vector<16x128xf32>
    tpu.vector_store %arg12[%c0_32, %c0_33], %43 {strides = array<i32>} : memref<16x128xf32, #tpu.memory_space<vmem>>, vector<16x128xf32>,
    return
  }
  func.func @transform_0(%arg0: i32) -> (i32, i32) {
    %c0_i32 = arith.constant 0 : i32
    %c0_i32_0 = arith.constant 0 : i32
    return %arg0, %c0_i32 : i32, i32
  }
  func.func @transform_1(%arg0: i32) -> (i32, i32) {
    %c0_i32 = arith.constant 0 : i32
    %c0_i32_0 = arith.constant 0 : i32
    %c0_i32_1 = arith.constant 0 : i32
    return %c0_i32, %c0_i32_0 : i32, i32
  }
  func.func @transform_2(%arg0: i32) -> (i32, i32) {
    %c0_i32 = arith.constant 0 : i32
    %c0_i32_0 = arith.constant 0 : i32
    %c0_i32_1 = arith.constant 0 : i32
    return %c0_i32, %c0_i32_0 : i32, i32
  }
  func.func @transform_3(%arg0: i32) -> (i32, i32) {
    %c0_i32 = arith.constant 0 : i32
    %c0_i32_0 = arith.constant 0 : i32
    %c0_i32_1 = arith.constant 0 : i32
    return %c0_i32, %c0_i32_0 : i32, i32
  }
  func.func @transform_4(%arg0: i32) -> (i32, i32) {
    %c0_i32 = arith.constant 0 : i32
    %c0_i32_0 = arith.constant 0 : i32
    %c0_i32_1 = arith.constant 0 : i32
    return %c0_i32, %c0_i32_0 : i32, i32
  }
  func.func @transform_5(%arg0: i32) -> (i32, i32) {
    %c0_i32 = arith.constant 0 : i32
    %c0_i32_0 = arith.constant 0 : i32
    %c0_i32_1 = arith.constant 0 : i32
    return %c0_i32, %c0_i32_0 : i32, i32
  }
  func.func @transform_6(%arg0: i32) -> (i32, i32) {
    %c0_i32 = arith.constant 0 : i32
    %c0_i32_0 = arith.constant 0 : i32
    %c0_i32_1 = arith.constant 0 : i32
    return %c0_i32, %c0_i32_0 : i32, i32
  }
  func.func @transform_7(%arg0: i32) -> (i32, i32) {
    %c0_i32 = arith.constant 0 : i32
    %c0_i32_0 = arith.constant 0 : i32
    %c0_i32_1 = arith.constant 0 : i32
    return %c0_i32, %c0_i32_0 : i32, i32
  }
  func.func @transform_8(%arg0: i32) -> (i32, i32) {
    %c0_i32 = arith.constant 0 : i32
    %c0_i32_0 = arith.constant 0 : i32
    %c0_i32_1 = arith.constant 0 : i32
    return %c0_i32, %c0_i32_0 : i32, i32
  }
  func.func @transform_9(%arg0: i32) -> (i32, i32) {
    %c0_i32 = arith.constant 0 : i32
    %c0_i32_0 = arith.constant 0 : i32
    %c0_i32_1 = arith.constant 0 : i32
    return %c0_i32, %c0_i32_0 : i32, i32
  }
  func.func @transform_10(%arg0: i32) -> (i32, i32) {
    %c0_i32 = arith.constant 0 : i32
    %c0_i32_0 = arith.constant 0 : i32
    %c0_i32_1 = arith.constant 0 : i32
    return %c0_i32, %c0_i32_0 : i32, i32
  }
  func.func @transform_11(%arg0: i32) -> (i32, i32) {
    %c0_i32 = arith.constant 0 : i32
    %c0_i32_0 = arith.constant 0 : i32
    return %arg0, %c0_i32 : i32, i32
  }
}

</mosaic_0001>

<bundles_post_ra>
// kernel: forward.1
= control target key start
LH: loop header
LB: loop body
LE: loop exit
PB: predicated region body
PF: predicated region fallthrough
CT: control target
= control target key end

     0   :  { %16 = vsyncpa [#allocation3], 0  ;;  %s1415_s0 = inlined_call_operand.vmem [shape: bf16[2,8], index: 0, kind: input, shape index: {}]   ;;  %s1416_s1 = inlined_call_operand.vmem [shape: bf16[8,128], index: 1, kind: input, shape index: {}]   ;;  %s1417_s2 = inlined_call_operand.hbm [shape: f32[1,128], index: 2, kind: input, shape index: {}]   ;;  %s1418_s3 = inlined_call_operand.hbm [shape: bf16[128,128], index: 3, kind: input, shape index: {}]   ;;  %s1419_s4 = inlined_call_operand.vmem [shape: f32[1,128], index: 4, kind: input, shape index: {}]   ;;  %s1420_s5 = inlined_call_operand.hbm [shape: bf16[128,256], index: 5, kind: input, shape index: {}]   ;;  %s1421_s6 = inlined_call_operand.vmem [shape: f32[1,256], index: 6, kind: input, shape index: {}]   ;;  %s1422_s7 = inlined_call_operand.hbm [shape: bf16[256,32], index: 7, kind: input, shape index: {}]   ;;  %s1423_s8 = inlined_call_operand.vmem [shape: f32[1,32], index: 8, kind: input, shape index: {}]   ;;  %s1424_s9 = inlined_call_operand.hbm [shape: f32[32,32], index: 9, kind: input, shape index: {}]   ;;  %s1425_s10 = inlined_call_operand.hbm [shape: f32[32,128], index: 10, kind: input, shape index: {}]   ;;  %s1426_s11 = inlined_call_operand.hbm [shape: f32[2,128], index: 11, kind: output, shape index: {}]  }
   0x1   :  { %17 = vsyncpa [#allocation6], 0 }
   0x2   :  { %18 = vsyncpa [#allocation9], 0 }
   0x3   :  { %19 = vsyncpa [#allocation12], 0 }
   0x4   :  { %20 = vsyncpa [#allocation4], 0  ;;  %s1270_s17 = smov [#allocation5]  }
   0x5   :  { %s40_s18 = sshll.u32 %s1270_s17, 4  ;;  %s41_s18 = int_to_ptr.vmem [resolvable:$true] %s40_s18 }
   0x6   :  { %s1128_s19 = scalar_lea.vmem %s41_s18, 1024  ;;  %p1133_p1 = scmp.lt.s32.totalorder %s41_s18, %s41_s18 }
   0x7   :  { %p1129_p0 = scmp.ne.s32.totalorder %s41_s18, %s1128_s19  ;;  %p1134_p2 = scmp.lt.s32.totalorder %s1128_s19, %s1128_s19 }
   0x9   :  { %p1135_p3 = por %p1134_p2, %p1133_p1 }
   0xb   :  { %p1136_p4 = pnand %p1135_p3, %p1129_p0 }
   0xd   :  { %1139 = shalt.err (!%p1136_p4)
}
   0xe   :  { %s1271_s20 = smov 64   ;;  %s1272_s21 = smov 4  }
   0xf   :  { %46 = dma.hbm_to_vmem [thread:$0]  %s1418_s3, 1024, %s41_s18, [#allocation6], %s1271_s20, %s1271_s20, %s1272_s21  }
  0x10   :  { %s1273_s24 = smov [#allocation8]   ;;  %s1274_s26 = smov [#allocation2]  }
  0x11   :  { %s68_s25 = sshll.u32 %s1273_s24, 4  ;;  %s31_s27 = sshll.u32 %s1274_s26, 4  ;;  %s69_s25 = int_to_ptr.vmem [resolvable:$true] %s68_s25  ;;  %s32_s27 = int_to_ptr.vmem [resolvable:$true] %s31_s27 }
  0x12   :  { %s1148_s28 = scalar_lea.vmem %s69_s25, 2048  ;;  %p1153_p6 = scmp.lt.s32.totalorder %s69_s25, %s69_s25 }
  0x13   :  { %p1149_p5 = scmp.ne.s32.totalorder %s69_s25, %s1148_s28  ;;  %p1154_p7 = scmp.lt.s32.totalorder %s1148_s28, %s1148_s28 }
  0x15   :  { %p1155_p8 = por %p1154_p7, %p1153_p6 }
  0x17   :  { %p1156_p9 = pnand %p1155_p8, %p1149_p5 }
  0x19   :  { %1159 = shalt.err (!%p1156_p9)
}
  0x1a   :  { %74 = dma.hbm_to_vmem [thread:$0]  %s1422_s7, 2048, %s69_s25, [#allocation9], %s1271_s20, %s1271_s20, %s1272_s21  }
  0x1b   :  { %s1168_s12 = scalar_lea.vmem %s32_s27, 16  ;;  %s1172_s3 = scalar_lea.vmem %s32_s27, 32 }
  0x1c   :  { %p1169_p10 = scmp.ne.s32.totalorder %s32_s27, %s1168_s12  ;;  %p1173_p11 = scmp.lt.s32.totalorder %s32_s27, %s32_s27 }
  0x1d   :  { %p1174_p12 = scmp.lt.s32.totalorder %s1172_s3, %s1168_s12 }
  0x1f   :  { %p1175_p13 = por %p1174_p12, %p1173_p11 }
  0x21   :  { %p1176_p0 = pnand %p1175_p13, %p1169_p10 }
  0x23   :  { %1179 = shalt.err (!%p1176_p0)
}
  0x24   :  { %34 = dma.hbm_to_vmem [thread:$0]  %s1417_s2, 16, %s32_s27, [#allocation3]  }
  0x25   :  { %s1275_s15 = smov [#allocation7]  }
  0x26   :  { %s54_s16 = sshll.u32 %s1275_s15, 4  ;;  %s55_s16 = int_to_ptr.vmem [resolvable:$true] %s54_s16 }
  0x27   :  { %s1188_s17 = scalar_lea.vmem %s55_s16, 2048  ;;  %p1193_p2 = scmp.lt.s32.totalorder %s55_s16, %s55_s16 }
  0x28   :  { %p1189_p1 = scmp.ne.s32.totalorder %s55_s16, %s1188_s17  ;;  %p1194_p3 = scmp.lt.s32.totalorder %s1188_s17, %s1188_s17 }
  0x2a   :  { %p1195_p4 = por %p1194_p3, %p1193_p2 }
  0x2c   :  { %p1196_p5 = pnand %p1195_p4, %p1189_p1 }
  0x2e   :  { %1199 = shalt.err (!%p1196_p5)
}
  0x2f   :  { %s1276_s7 = smov 128   ;;  %s1277_s18 = smov 8  }
  0x30   :  { %60 = dma.hbm_to_vmem [thread:$0]  %s1420_s5, 2048, %s55_s16, [#allocation6], %s1276_s7, %s1276_s7, %s1277_s18  }
  0x31   :  { %s1278_s21 = smov [#allocation10]   ;;  %s1279_s23 = smov [#allocation11]  }
  0x32   :  { %s82_s22 = sshll.u32 %s1278_s21, 4  ;;  %s94_s2 = sshll.u32 %s1279_s23, 4  ;;  %s83_s22 = int_to_ptr.vmem [resolvable:$true] %s82_s22  ;;  %s95_s2 = int_to_ptr.vmem [resolvable:$true] %s94_s2 }
  0x33   :  { %s1208_s24 = scalar_lea.vmem %s83_s22, 512  ;;  %p1213_p7 = scmp.lt.s32.totalorder %s83_s22, %s83_s22 }
  0x34   :  { %p1209_p6 = scmp.ne.s32.totalorder %s83_s22, %s1208_s24  ;;  %p1214_p8 = scmp.lt.s32.totalorder %s1208_s24, %s1208_s24 }
  0x36   :  { %p1215_p9 = por %p1214_p8, %p1213_p7 }
  0x38   :  { %p1216_p10 = pnand %p1215_p9, %p1209_p6 }
  0x3a   :  { %1219 = shalt.err (!%p1216_p10)
}
  0x3b   :  { %88 = dma.hbm_to_vmem [thread:$0]  %s1424_s9, 512, %s83_s22, [#allocation9], %s1276_s7, %s1276_s7, %s1277_s18  }
  0x3c   :  { %s1228_s27 = scalar_lea.vmem %s95_s2, 512  ;;  %p1233_p12 = scmp.lt.s32.totalorder %s95_s2, %s95_s2 }
  0x3d   :  { %p1229_p11 = scmp.ne.s32.totalorder %s95_s2, %s1228_s27  ;;  %p1234_p13 = scmp.lt.s32.totalorder %s1228_s27, %s1228_s27 }
  0x3f   :  { %p1235_p0 = por %p1234_p13, %p1233_p12 }
  0x41   :  { %p1236_p1 = pnand %p1235_p0, %p1229_p11 }
  0x43   :  { %1239 = shalt.err (!%p1236_p1)
}
  0x44   :  { %100 = dma.hbm_to_vmem [thread:$0]  %s1425_s10, 512, %s95_s2, [#allocation12], %s1276_s7, %s1276_s7, %s1277_s18  }
  0x45   :  { %1260 = dma.done.wait [#allocation3], 16  }
  0x46   :  { %1261 = vsyncadd [#allocation3], 4294967280 }
  0x47   :  { %1262 = dma.done.wait [#allocation6], 3072  }
  0x48   :  { %1263 = vsyncadd [#allocation6], 4294964224 }
  0x49   :  { %1264 = dma.done.wait [#allocation9], 2560  }
  0x4a   :  { %1265 = vsyncadd [#allocation9], 4294964736 }
  0x4b   :  { %1266 = dma.done.wait [#allocation12], 512  }
  0x4c   :  { %1267 = vsyncadd [#allocation12], 4294966784  ;;  %v151_v0 = vlaneseq  ;;  %v1280_v1 = vmov 0.0   ;;  %vm1281_vm0 = vmmov 0   ;;  %v1282_v2 = vmov 1966171168  }
  0x4d   :  { %999 = vmatprep.subr.bf16.mxu0 %v1280_v1  ;;  %1001 = vmatprep.mubr.msk.bf16.mxu0 %vm1281_vm0, %v1280_v1  ;;  %v149_v3 = vunpack.c.l.s4 %v1282_v2  ;;  %vm197_vm1 = vcmask 1043456   ;;  %v128_v7 = vld [vmem:[%s1416_s1] sm:$0xf]  ;;  %v124_v15 = vld [vmem:[%s1415_s0 + $0x4] sm:$0x1]  ;;  %v1065_v24 = vld [vmem:[#allocation5 + $0x30] sm:$0xff]  }
  0x4e   :  { %v1365_v4 = vshrl.u32 %v151_v0, 7  ;;  %1005 = vmatprep.subr.bf16.mxu1 %v1280_v1  ;;  %1021 = vmatprep.mubr.msk.bf16.mxu1 %vm1281_vm0, %v1280_v1  ;;  %v120_v8 = vld [vmem:[%s1415_s0] sm:$0x1]  ;;  %v121_v9 = vld [vmem:[%s1415_s0 + $0x1] sm:$0x1]  ;;  %v199_v10 = vsel %vm197_vm1, %v128_v7, 0 }
  0x4f   :  { %v150_v5 = vunpack.c.0.s8 %v149_v3  ;;  %v122_v11 = vld [vmem:[%s1415_s0 + $0x2] sm:$0x1]  ;;  %v123_v12 = vld [vmem:[%s1415_s0 + $0x3] sm:$0x1]  ;;  %v144_v13 = vcombine.low %v120_v8, %v121_v9  ;;  %v1064_v14 = vld [vmem:[#allocation5 + $0x38] sm:$0xff]   ;;  %1000 = vmatpush3.bf16.msra.mxu0 %v199_v10  ;;  %vm193_vm2 = vcmask 64512  }
  0x50   :  { %v125_v16 = vld [vmem:[%s1415_s0 + $0x5] sm:$0x1]  ;;  %v126_v17 = vld [vmem:[%s1415_s0 + $0x6] sm:$0x1]  ;;  %v145_v18 = vcombine.low %v122_v11, %v123_v12  ;;  %v127_v19 = vld [vmem:[%s1415_s0 + $0x7] sm:$0x1]  ;;  %1006 = vmatpush3.bf16.msra.mxu1 %v1064_v14 }
  0x51   :  { %v153_v6 = vsub.s32 %v150_v5, %v1365_v4  ;;  %v146_v20 = vcombine.low %v124_v15, %v125_v16  ;;  %v147_v22 = vcombine.low %v126_v17, %v127_v19  ;;  %1007 = vmatprep.subr.bf16.mxu1 %v1280_v1  ;;  %v1066_v28 = vld [vmem:[#allocation5 + $0x28] sm:$0xff]   ;;  %v1067_v31 = vld [vmem:[#allocation5 + $0x20] sm:$0xff]   ;;  %v1068_v34 = vld [vmem:[#allocation5 + $0x18] sm:$0xff]   ;;  %v1283_v0 = vmov 0  }
  0x52   :  { %v1069_v35 = vld [vmem:[#allocation5 + $0x10] sm:$0xff]   ;;  %v1070_v36 = vld [vmem:[#allocation5 + $0x8] sm:$0xff]   ;;  %v1071_v37 = vld [vmem:[#allocation5] sm:$0xff]   ;;  %vm693_vm3 = vcmask 261120  }
  0x53   :  { %v154_v21 = vrot.slane %v144_v13, %v153_v6  ;;  %v161_v23 = vrot.slane %v145_v18, %v153_v6  ;;  %v168_v25 = vrot.slane %v146_v20, %v153_v6  ;;  %v175_v26 = vrot.slane %v147_v22, %v153_v6  ;;  %v1072_v38 = vld [vmem:[#allocation7 + $0x70] ss:$8 sps:$4 sm:$0xff]   ;;  %v1074_v39 = vld [vmem:[#allocation7 + $0x74] ss:$8 sps:$4 sm:$0xff]   ;;  %v1077_v40 = vld [vmem:[#allocation7 + $0x64] ss:$8 sps:$4 sm:$0xff]  }
  0x54   :  { %1008 = vmatpush3.bf16.msra.mxu1 %v1065_v24  ;;  %468 = vmatprep.subr.bf16.mxu0 %v1074_v39  ;;  %v1075_v41 = vld [vmem:[#allocation7 + $0x60] ss:$8 sps:$4 sm:$0xff]   ;;  %v1080_v42 = vld [vmem:[#allocation7 + $0x54] ss:$8 sps:$4 sm:$0xff]   ;;  %v1078_v43 = vld [vmem:[#allocation7 + $0x50] ss:$8 sps:$4 sm:$0xff]  }
  0x55   :  { %v176_v27 = vcombine.low %v154_v21, %v161_v23  ;;  %v177_v29 = vcombine.low %v168_v25, %v175_v26  ;;  %1009 = vmatprep.subr.bf16.mxu1 %v1280_v1  ;;  %v1083_v44 = vld [vmem:[#allocation7 + $0x44] ss:$8 sps:$4 sm:$0xff]   ;;  %v1081_v45 = vld [vmem:[#allocation7 + $0x40] ss:$8 sps:$4 sm:$0xff]   ;;  %v1086_v46 = vld [vmem:[#allocation7 + $0x34] ss:$8 sps:$4 sm:$0xff]  }
  0x56   :  { %v1084_v47 = vld [vmem:[#allocation7 + $0x30] ss:$8 sps:$4 sm:$0xff]   ;;  %v1089_v48 = vld [vmem:[#allocation7 + $0x24] ss:$8 sps:$4 sm:$0xff]   ;;  %v1087_v49 = vld [vmem:[#allocation7 + $0x20] ss:$8 sps:$4 sm:$0xff]  }
  0x57   :  { %v184_v30 = vrot.slane %v176_v27, %v153_v6  ;;  %v191_v32 = vrot.slane %v177_v29, %v153_v6  ;;  %v906_v50 = vld [vmem:[#allocation2] ss:$0 sm:$0xff]  ;;  %v1090_v61 = vld [vmem:[#allocation7 + $0x10] ss:$8 sps:$4 sm:$0xff]   ;;  %v1095_v62 = vld [vmem:[#allocation7 + $0x4] ss:$8 sps:$4 sm:$0xff]  }
  0x58   :  { %1010 = vmatpush3.bf16.msra.mxu1 %v1066_v28  ;;  %v1092_v60 = vld [vmem:[#allocation7 + $0x14] ss:$8 sps:$4 sm:$0xff]   ;;  %v1093_v63 = vld [vmem:[#allocation7] ss:$8 sps:$4 sm:$0xff]   ;;  %v384_v28 = vsub.s32 1, %v1365_v4  ;;  %v380_v29 = vsub.s32 0, %v1365_v4 }
  0x59   :  { %v192_v33 = vcombine.low %v184_v30, %v191_v32  ;;  %1011 = vmatprep.subr.bf16.mxu1 %v1280_v1  ;;  %v1097_v2 = vld [vmem:[#allocation8 + $0x38] sm:$0xff]   ;;  %v1098_v3 = vld [vmem:[#allocation8 + $0x70] sm:$0xff]   ;;  %v1100_v6 = vld [vmem:[#allocation8 + $0x68] sm:$0xff]  }
  0x5a   :  { %v1099_v5 = vld [vmem:[#allocation8 + $0x30] sm:$0xff]   ;;  %v1101_v7 = vld [vmem:[#allocation8 + $0x28] sm:$0xff]   ;;  %v1102_v8 = vld [vmem:[#allocation8 + $0x60] sm:$0xff]  }
  0x5b   :  { %1002 = vmatmul.mubr.msk.bf16.vlgmr.msra.gmra.mxu0 %vm193_vm2, %v192_v33  ;;  %v1103_v9 = vld [vmem:[#allocation8 + $0x20] sm:$0xff]   ;;  %v1104_v10 = vld [vmem:[#allocation8 + $0x58] sm:$0xff]   ;;  %v1106_v22 = vld [vmem:[#allocation8 + $0x50] sm:$0xff]  }
  0x5c   :  { %1012 = vmatpush3.bf16.msra.mxu1 %v1067_v31  ;;  %469 = vmatpush1.bf16.msra.mxu0 %v1072_v38  ;;  %v1105_v11 = vld [vmem:[#allocation8 + $0x18] sm:$0xff]   ;;  %v1107_v23 = vld [vmem:[#allocation8 + $0x10] sm:$0xff]   ;;  %v1108_v24 = vld [vmem:[#allocation8 + $0x48] sm:$0xff]  }
  0x5d   :  { %1013 = vmatprep.subr.bf16.mxu1 %v1280_v1  ;;  %470 = vmatprep.subr.bf16.mxu0 %v1077_v40  ;;  %v908_v12 = vld [vmem:[%s1419_s4] ss:$0 sm:$0xff]  ;;  %v1109_v25 = vld [vmem:[#allocation8 + $0x8] sm:$0xff]   ;;  %v1110_v26 = vld [vmem:[#allocation8 + $0x40] sm:$0xff]  }
  0x5e   :  { %500 = vmatprep.mubr.bf16.mxu0 %v1283_v0  ;;  %v1111_v27 = vld [vmem:[#allocation8] sm:$0xff]   ;;  %v376_v30 = vld [vmem:[%s1421_s6] sm:$0x3] }
  0x5f   :  { %v385_v32 = vrot.slane %v376_v30, %v384_v28  ;;  %v381_v33 = vrot.slane %v376_v30, %v380_v29 }
  0x60   :  { %1014 = vmatpush3.bf16.msra.mxu1 %v1068_v34  ;;  %471 = vmatpush1.bf16.msra.mxu0 %v1075_v41 }
  0x61   :  { %1015 = vmatprep.subr.bf16.mxu1 %v1280_v1  ;;  %472 = vmatprep.subr.bf16.mxu0 %v1080_v42 }
  0x64   :  { %1016 = vmatpush3.bf16.msra.mxu1 %v1069_v35  ;;  %473 = vmatpush1.bf16.msra.mxu0 %v1078_v43 }
  0x65   :  { %1017 = vmatprep.subr.bf16.mxu1 %v1280_v1  ;;  %474 = vmatprep.subr.bf16.mxu0 %v1083_v44 }
  0x68   :  { %1018 = vmatpush3.bf16.msra.mxu1 %v1070_v36  ;;  %475 = vmatpush1.bf16.msra.mxu0 %v1081_v45 }
  0x69   :  { %1019 = vmatprep.subr.bf16.mxu1 %v1280_v1  ;;  %476 = vmatprep.subr.bf16.mxu0 %v1086_v46  ;;  %v1096_v1 = vld [vmem:[#allocation8 + $0x78] sm:$0xff]  }
  0x6c   :  { %1020 = vmatpush3.bf16.msra.mxu1 %v1071_v37  ;;  %477 = vmatpush1.bf16.msra.mxu0 %v1084_v47 }
  0x6d   :  { %478 = vmatprep.subr.bf16.mxu0 %v1089_v48  ;;  %965 = vmatprep.subr.bf16.mxu1 %v1096_v1  ;;  %v933_v48 = vld [vmem:[%s1423_s8] ss:$0 sm:$0xff] }
  0x70   :  { %479 = vmatpush1.bf16.msra.mxu0 %v1087_v49 }
  0x71   :  { %480 = vmatprep.subr.bf16.mxu0 %v1092_v60  ;;  %v706_v60 = vld [vmem:[#allocation10] sm:$0xff] }
  0x74   :  { %481 = vmatpush1.bf16.msra.mxu0 %v1090_v61 }
  0x75   :  { %482 = vmatprep.subr.bf16.mxu0 %v1095_v62 }
  0x78   :  { %483 = vmatpush1.bf16.msra.mxu0 %v1093_v63 }
 0x11b   :  { %v235_v51 = vpop.f32.mrf.mxu0 }
 0x11c   :  { %v236_v53 = vadd.f32 %v906_v50, %v235_v51 }
 0x11d   :  { %v1003_v52 = vpop.f32.mrf.mxu0 }
 0x11e   :  { %v242_v57 = vmax.f32 %v236_v53, 0.0 }
 0x11f   :  { %v238_v54 = vpop.f32.mrf.mxu0 }
 0x120   :  { %v239_v55 = vadd.f32 %v906_v50, %v238_v54 }
 0x121   :  { %v1004_v56 = vpop.f32.mrf.mxu0 }
 0x122   :  { %v243_v58 = vmax.f32 %v239_v55, 0.0 }
 0x124   :  { %v244_v59 = vpack.c.bf16 %v243_v58, %v242_v57  ;;  %v709_v57 = vld [vmem:[#allocation10 + $0x18] sm:$0xff]  ;;  %v708_v58 = vld [vmem:[#allocation10 + $0x10] sm:$0xff] }
 0x125   :  { %1025 = vmatprep.subr.mxu0 %v709_v57 }
 0x126   :  { %1022 = vmatmul.mubr.bf16.vlgmr.msra.gmra.mxu1 %v244_v59  ;;  %v707_v59 = vld [vmem:[#allocation10 + $0x8] sm:$0xff] }
 0x127   :  { %966 = vmatpush3.bf16.msra.mxu1 %v1097_v2 }
 0x128   :  { %967 = vmatprep.subr.bf16.mxu1 %v1098_v3 }
 0x12b   :  { %968 = vmatpush3.bf16.msra.mxu1 %v1099_v5 }
 0x12c   :  { %969 = vmatprep.subr.bf16.mxu1 %v1100_v6  ;;  %v802_v6 = vld [vmem:[#allocation11 + $0x18] sm:$0xff] }
 0x12f   :  { %970 = vmatpush3.bf16.msra.mxu1 %v1101_v7  ;;  %v801_v7 = vld [vmem:[#allocation11 + $0x10] sm:$0xff] }
 0x130   :  { %971 = vmatprep.subr.bf16.mxu1 %v1102_v8  ;;  %v800_v8 = vld [vmem:[#allocation11 + $0x8] sm:$0xff] }
 0x133   :  { %972 = vmatpush3.bf16.msra.mxu1 %v1103_v9  ;;  %v799_v9 = vld [vmem:[#allocation11] sm:$0xff] }
 0x134   :  { %973 = vmatprep.subr.bf16.mxu1 %v1104_v10 }
 0x137   :  { %974 = vmatpush3.bf16.msra.mxu1 %v1105_v11 }
 0x138   :  { %975 = vmatprep.subr.bf16.mxu1 %v1106_v22 }
 0x13b   :  { %976 = vmatpush3.bf16.msra.mxu1 %v1107_v23 }
 0x13c   :  { %977 = vmatprep.subr.bf16.mxu1 %v1108_v24 }
 0x13f   :  { %978 = vmatpush3.bf16.msra.mxu1 %v1109_v25 }
 0x140   :  { %979 = vmatprep.subr.bf16.mxu1 %v1110_v26 }
 0x143   :  { %980 = vmatpush3.bf16.msra.mxu1 %v1111_v27 }
 0x1e6   :  { %v350_v13 = vpop.f32.mrf.mxu1 }
 0x1e7   :  { %v351_v15 = vadd.f32 %v908_v12, %v350_v13 }
 0x1e8   :  { %v1023_v14 = vpop.f32.mrf.mxu1 }
 0x1e9   :  { %v357_v19 = vmax.f32 %v351_v15, 0.0 }
 0x1ea   :  { %v353_v16 = vpop.f32.mrf.mxu1 }
 0x1eb   :  { %v354_v17 = vadd.f32 %v908_v12, %v353_v16 }
 0x1ec   :  { %v1024_v18 = vpop.f32.mrf.mxu1 }
 0x1ed   :  { %v358_v20 = vmax.f32 %v354_v17, 0.0 }
 0x1ef   :  { %v359_v21 = vpack.c.bf16 %v358_v20, %v357_v19 }
 0x1f1   :  { %501 = vmatmul.mubr.bf16.vlgmr.msra.gmra.mxu0 %v359_v21 }
 0x1f2   :  { %1026 = vmatpush3.msra.mxu0 %v709_v57 }
 0x1f3   :  { %1027 = vmatprep.subr.mxu0 %v708_v58 }
 0x1f4   :  { %1028 = vmatpush3.msra.mxu0 %v708_v58 }
 0x1f5   :  { %1029 = vmatprep.subr.mxu0 %v707_v59 }
 0x1f6   :  { %1030 = vmatpush3.msra.mxu0 %v707_v59 }
 0x1f7   :  { %1031 = vmatprep.subr.mxu0 %v706_v60 }
 0x1f8   :  { %1032 = vmatpush3.msra.mxu0 %v706_v60 }
 0x1f9   :  { %1036 = vmatprep.subr.mxu0 %v802_v6 }
 0x2b1   :  { %v502_v31 = vpop.f32.mrf.mxu0 }
 0x2b2   :  { %v503_v38 = vadd.f32 %v502_v31, %v381_v33 }
 0x2b3   :  { %v504_v34 = vpop.f32.mrf.mxu0 }
 0x2b4   :  { %v505_v36 = vadd.f32 %v504_v34, %v385_v32  ;;  %v511_v44 = vmax.f32 %v503_v38, 0.0 }
 0x2b5   :  { %v506_v35 = vpop.f32.mrf.mxu0 }
 0x2b6   :  { %v507_v37 = vadd.f32 %v506_v35, %v381_v33  ;;  %v512_v42 = vmax.f32 %v505_v36, 0.0 }
 0x2b7   :  { %v508_v39 = vpop.f32.mrf.mxu0 }
 0x2b8   :  { %v509_v40 = vadd.f32 %v508_v39, %v385_v32  ;;  %v513_v41 = vmax.f32 %v507_v37, 0.0 }
 0x2ba   :  { %v514_v43 = vmax.f32 %v509_v40, 0.0  ;;  %v515_v4 = vpack.c.bf16 %v513_v41, %v511_v44 }
 0x2bc   :  { %v516_v45 = vpack.c.bf16 %v514_v43, %v512_v42 }
 0x2be   :  { %684 = vmatprep.mubr.bf16.mxu1 %v516_v45 }
 0x2bf   :  { %685 = vmatmul.mubr.bf16.vlgmr.msra.gmra.mxu1 %v515_v4 }
 0x37f   :  { %v981_v46 = vpop.f32.mrf.mxu1 }
 0x381   :  { %v982_v47 = vpop.f32.mrf.mxu1 }
 0x382   :  { %v983_v49 = vadd.f32 %v982_v47, %v981_v46 }
 0x383   :  { %v984_v50 = vpop.f32.mrf.mxu1 }
 0x384   :  { %v687_v51 = vadd.f32 %v983_v49, %v933_v48 }
 0x385   :  { %v985_v52 = vpop.f32.mrf.mxu1 }
 0x386   :  { %v986_v53 = vadd.f32 %v985_v52, %v984_v50  ;;  %v694_v54 = vsel %vm693_vm3, %v687_v51, -inf }
 0x387   :  { %695 = vmax.xlane.f32.xlu0 %v694_v54 }
 0x388   :  { %v690_v55 = vadd.f32 %v986_v53, %v933_v48 }
 0x38a   :  { %v697_v56 = vsel %vm693_vm3, %v690_v55, -inf }
 0x38b   :  { %698 = vmax.xlane.f32.xlu0 %v697_v56 }
 0x410   :  { %v696_v61 = vpop.xlane.xlu0 %695 }
 0x411   :  { %v700_v62 = vsub.f32 %v687_v51, %v696_v61 }
 0x413   :  { %v702_v63 = vmul.f32 1.442695, %v700_v62 }
 0x414   :  { %v699_v0 = vpop.xlane.xlu0 %698 }
 0x415   :  { %1112 = vpow2.f32 %v702_v63  ;;  %v701_v1 = vsub.f32 %v690_v55, %v699_v0 }
 0x417   :  { %v704_v2 = vmul.f32 1.442695, %v701_v1 }
 0x419   :  { %1114 = vpow2.f32 %v704_v2 }
 0x422   :  { %v1113_v3 = vpop.eup %1112 }
 0x423   :  { %1033 = vmatprep.mubr.msk.f32.mxu0 %vm693_vm3, %v1113_v3 }
 0x426   :  { %v1115_v5 = vpop.eup %1114 }
 0x427   :  { %1034 = vmatmul.mubr.msk.f32.vlgmr.msra.gmra.mxu0 %vm693_vm3, %v1115_v5 }
 0x428   :  { %1037 = vmatpush3.msra.mxu0 %v802_v6 }
 0x429   :  { %1038 = vmatprep.subr.mxu0 %v801_v7 }
 0x42a   :  { %1039 = vmatpush3.msra.mxu0 %v801_v7 }
 0x42b   :  { %1040 = vmatprep.subr.mxu0 %v800_v8 }
 0x42c   :  { %1041 = vmatpush3.msra.mxu0 %v800_v8 }
 0x42d   :  { %1042 = vmatprep.subr.mxu0 %v799_v9 }
 0x42e   :  { %1043 = vmatpush3.msra.mxu0 %v799_v9 }
 0x4e7   :  { %v1035_v10 = vpop.f32.mrf.mxu0 }
 0x4e8   :  { %v792_v11 = vmax.f32 %v1035_v10, 1e-30 }
 0x4e9   :  { %v782_v12 = vpop.f32.mrf.mxu0 }
 0x4ea   :  { %1116 = vrcp.f32 %v792_v11  ;;  %v791_v13 = vmax.f32 %v782_v12, 1e-30 }
 0x4ec   :  { %1118 = vrcp.f32 %v791_v13 }
 0x4f7   :  { %v1117_v14 = vpop.eup %1116 }
 0x4f8   :  { %v796_v16 = vmul.f32 %v1117_v14, %v1115_v5 }
 0x4f9   :  { %v1119_v15 = vpop.eup %1118 }
 0x4fa   :  { %v794_v17 = vmul.f32 %v1119_v15, %v1113_v3  ;;  %v798_v19 = vmax.f32 %v796_v16, 0.001 }
 0x4fc   :  { %v797_v18 = vmax.f32 %v794_v17, 0.001 }
 0x4fe   :  { %1044 = vmatprep.mubr.msk.f32.mxu0 %vm693_vm3, %v797_v18 }
 0x4ff   :  { %1045 = vmatmul.mubr.msk.f32.vlgmr.msra.gmra.mxu0 %vm693_vm3, %v798_v19 }
 0x5bf   :  { %v1046_v20 = vpop.f32.mrf.mxu0 }
 0x5c0   :  { %885 = vst [vmem:[#allocation13 + $0x8] sm:$0xff] %v1046_v20 }
 0x5c1   :  { %v875_v21 = vpop.f32.mrf.mxu0 }
 0x5c2   :  { %884 = vst [vmem:[#allocation13] sm:$0xff] %v875_v21 }
 0x5c3   :  { %890 = vsyncadd [#allocation4], 224  ;;  %s1284_s8 = smov [#allocation13]  }
 0x5c4   :  { %s891_s25 = sshll.u32 %s1284_s8, 4  ;;  %s892_s25 = int_to_ptr.vmem [resolvable:$true] %s891_s25 }
 0x5c5   :  { %s1240_s26 = scalar_lea.vmem %s892_s25, 32  ;;  %s1244_s27 = scalar_lea.vmem %s892_s25, 256 }
 0x5c6   :  { %p1241_p2 = scmp.ne.s32.totalorder %s892_s25, %s1240_s26  ;;  %p1245_p3 = scmp.lt.s32.totalorder %s892_s25, %s892_s25 }
 0x5c7   :  { %p1246_p4 = scmp.lt.s32.totalorder %s1244_s27, %s1240_s26 }
 0x5c9   :  { %p1247_p5 = por %p1246_p4, %p1245_p3 }
 0x5cb   :  { %p1248_p6 = pnand %p1247_p5, %p1241_p2 }
 0x5cd   :  { %1251 = shalt.err (!%p1248_p6)
}
 0x5ce   :  { %s1285_s5 = smov 32   ;;  %s1286_s28 = smov 2  }
 0x5cf   :  { %897 = dma.vmem_to_hbm [thread:$0]  %s892_s25, 32, %s1426_s11, [#allocation4], %s1285_s5, %s1285_s5, %s1286_s28  }
 0x5d0   :  { %1268 = dma.done.wait [#allocation4], 256  }
 0x5d1   :  { %1269 = vsyncadd [#allocation4], 4294967040 }
 0x5d2   :  { %901 = vsyncpa [#allocation3], 1 }
 0x5d3   :  { %902 = vsyncpa [#allocation6], 1 }
 0x5d4   :  { %903 = vsyncpa [#allocation9], 1 }
 0x5d5   :  { %904 = vsyncpa [#allocation12], 1 }
 0x5d6   :  { %905 = vsyncpa [#allocation4], 1 }

</bundles_post_ra>
